<compile_context>
chip_gen: v7x
topology: tpu7x:2x2x1
jax: 0.10.0
libtpu: 0.0.40
codegen_flags: <defaults>
</compile_context>

<pallas_src>
import jax
import jax.numpy as jnp
from jax.experimental import pallas as pl
from jax.experimental.pallas import tpu as pltpu

LANE = 128
SUBLANE = 8
MAX_BLOCK_ROWS = 1024


def _round_up(x, m):
    return (x + m - 1) // m * m


def _choose_block_rows(total):
    # Large tiles amortize the ~0.35 us per-step pipeline overhead (>=512 rows
    # reaches ~85% of HBM roofline); for smaller batches keep >=2 grid steps so
    # the "parallel" axis can be split across both v7x TensorCores.
    if total >= 2 * MAX_BLOCK_ROWS:
        return MAX_BLOCK_ROWS
    return max(SUBLANE, _round_up(pl.cdiv(total, 2), SUBLANE))


def _onehot_gather_kernel(ids_ref, emb_ref, out_ref):
    # ids_ref: VMEM (1, BR) int32            -- lane-dense id row for this tile
    # emb_ref: VMEM (VOCAB_PAD, TOKEN_PAD)   -- full padded table, resident
    # out_ref: VMEM (BR, TOKEN_PAD)
    br = ids_ref.shape[-1]
    vocab_pad = emb_ref.shape[0]
    ids = ids_ref[...]                                              # (1, BR)
    # Transposed one-hot (VOCAB_PAD, BR): sublane-broadcast id row vs iota on
    # dim 0.  Contracting on dim 0 below keeps the MXU from needing any
    # XLU transpose of the one-hot operand.
    row_iota = jax.lax.broadcasted_iota(jnp.int32, (vocab_pad, br), 0)
    one_hot = (ids == row_iota).astype(emb_ref.dtype)               # (VOCAB_PAD, BR)
    out = jax.lax.dot_general(
        one_hot, emb_ref[...],
        dimension_numbers=(((0,), (0,)), ((), ())),                 # one_hot.T @ table
        preferred_element_type=jnp.float32)                         # (BR, TOKEN_PAD)
    out_ref[...] = out.astype(out_ref.dtype)


def word2vec_forward(words, emb_table):
    """words: (m, n) int token ids; emb_table: (vocab, token_dim).

    Returns (m * n, token_dim) vectors (row i = vector of flattened word i),
    matching the PyTorch module's output layout.
    """
    vocab, token_dim = emb_table.shape
    m, n = words.shape
    total = m * n
    out_dtype = emb_table.dtype

    # Lane-dense padded dims derived from the actual table shape.
    vocab_pad = _round_up(vocab, LANE)
    token_pad = _round_up(token_dim, LANE)

    block_rows = _choose_block_rows(total)
    total_pad = _round_up(total, block_rows)
    num_tiles = total_pad // block_rows

    # Clamp ids so an out-of-vocabulary id never causes a silent OOB read
    # (padded rows gather row 0 and are sliced off below).
    ids = jnp.clip(words.reshape(total).astype(jnp.int32), 0, vocab - 1)
    ids = jnp.pad(ids, (0, total_pad - total)).reshape(num_tiles, 1, block_rows)

    # Zero-pad the table to (vocab_pad, token_pad): lane-dense MXU contraction
    # and a lane-dense output tile (padding columns sliced off after the call).
    emb = jnp.pad(emb_table, ((0, vocab_pad - vocab), (0, token_pad - token_dim)))

    # Explicit scoped-VMEM budget (v5e default is only 16 MiB).
    tbl_isz = jnp.dtype(emb.dtype).itemsize
    out_isz = jnp.dtype(out_dtype).itemsize
    out_tile_b = block_rows * token_pad * out_isz
    ids_tile_b = SUBLANE * block_rows * 4
    tbl_b = vocab_pad * token_pad * tbl_isz
    scratch_b = block_rows * vocab_pad * tbl_isz + block_rows * token_pad * 4
    vmem_budget = 2 * (out_tile_b + ids_tile_b + tbl_b) + scratch_b
    vmem_limit = int(min(max(2 * vmem_budget, 16 << 20), 48 << 20))

    out = pl.pallas_call(
        _onehot_gather_kernel,
        grid_spec=pltpu.PrefetchScalarGridSpec(
            num_scalar_prefetch=0,
            grid=(num_tiles,),
            in_specs=[
                # lane-dense id row; leading tile dim squeezed out in-kernel
                pl.BlockSpec((None, 1, block_rows), lambda i: (i, 0, 0)),
                # whole padded table resident in VMEM every step
                pl.BlockSpec((vocab_pad, token_pad), lambda i: (0, 0)),
            ],
            out_specs=pl.BlockSpec((block_rows, token_pad), lambda i: (i, 0)),
        ),
        out_shape=jax.ShapeDtypeStruct((total_pad, token_pad), out_dtype),
        compiler_params=pltpu.CompilerParams(
            # every output tile is independent -> shard across v7x's 2 TCs
            dimension_semantics=("parallel",),
            vmem_limit_bytes=vmem_limit,
        ),
    )(ids, emb)
    return out[:total, :token_dim]


if __name__ == "__main__":
    key = jax.random.PRNGKey(0)
    k_emb, k_ids = jax.random.split(key)

    # Deterministic synthetic "FastText" table (stands in for wiki.en.bin).
    # token_dim=300 mirrors FastText and exercises the 300 -> 384 lane padding.
    # Kept f32 so the reference check is exact; pass a bf16 table in production
    # to halve HBM traffic and use the MXU's native bf16 rate.
    VOCAB, TOKEN_DIM = 64, 300
    emb_table = jax.random.normal(k_emb, (VOCAB, TOKEN_DIM), dtype=jnp.float32)

    # Small word grid: m=2 sentences, n=8 tokens each.
    m, n = 2, 8
    words = jax.random.randint(k_ids, (m, n), 0, VOCAB, dtype=jnp.int32)

    vecs = jax.block_until_ready(word2vec_forward(words, emb_table))

    # Reference check against a plain-JAX embedding gather.
    ref = jnp.take(emb_table, words.reshape(-1), axis=0)
    assert vecs.shape == (m * n, TOKEN_DIM)
    assert jnp.allclose(vecs, ref, atol=1e-5, rtol=1e-5), "mismatch vs reference"

    print("KERNEL_OK")
</pallas_src>

<mosaic_0001>
module attributes {stable_mosaic.version = 11 : i64} {
  func.func @_onehot_gather_kernel(%arg0: i32, %arg1: memref<1x1x8xi32, #tpu.memory_space<vmem>>, %arg2: memref<128x384xf32, #tpu.memory_space<vmem>>, %arg3: memref<8x384xf32, #tpu.memory_space<vmem>>) attributes {dimension_semantics = [#tpu.dimension_semantics<parallel>], iteration_bounds = array<i64: 2>, scalar_prefetch = 0 : i64, scratch_operands = 0 : i64, tpu.core_type = #tpu.core_type<tc>, window_params = [{transform_indices = @transform_0, window_bounds = array<i64: 1, 1, 8>}, {pipeline_mode = #tpu.pipeline_mode<synchronous>, transform_indices = @transform_1, window_bounds = array<i64: 128, 384>}, {transform_indices = @transform_2, window_bounds = array<i64: 8, 384>}]} {
    %c0 = arith.constant 0 : index
    %c0_0 = arith.constant 0 : index
    %c0_1 = arith.constant 0 : index
    %0 = vector.load %arg1[%c0, %c0_0, %c0_1] : memref<1x1x8xi32, #tpu.memory_space<vmem>>, vector<1x1x8xi32>
    %1 = vector.shape_cast %0 : vector<1x1x8xi32> to vector<1x8xi32>
    %2 = tpu.iota {dimensions = array<i32: 0>} : vector<128x8xi32>
    %3 = vector.broadcast %1 : vector<1x8xi32> to vector<128x8xi32>
    %4 = arith.cmpi eq, %3, %2 : vector<128x8xi32>
    %5 = arith.extui %4 : vector<128x8xi1> to vector<128x8xi32>
    %6 = arith.sitofp %5 : vector<128x8xi32> to vector<128x8xf32>
    %c0_2 = arith.constant 0 : index
    %c0_3 = arith.constant 0 : index
    %7 = vector.load %arg2[%c0_2, %c0_3] : memref<128x384xf32, #tpu.memory_space<vmem>>, vector<128x384xf32>
    %cst = arith.constant dense<0.000000e+00> : vector<8x384xf32>
    %8 = tpu.matmul %6, %7, %cst {dimension_numbers = #tpu.dot_dimension_numbers<[0], [0], [1], [1], [0, 1, 1, 1], [], []>} : vector<128x8xf32>, vector<128x384xf32>, vector<8x384xf32> -> vector<8x384xf32>
    %c0_4 = arith.constant 0 : index
    %c0_5 = arith.constant 0 : index
    %9 = vector.load %arg3[%c0_4, %c0_5] : memref<8x384xf32, #tpu.memory_space<vmem>>, vector<8x384xf32>
    tpu.vector_store %arg3[%c0_4, %c0_5], %8 {strides = array<i32>} : memref<8x384xf32, #tpu.memory_space<vmem>>, vector<8x384xf32>,
    return
  }
  func.func @transform_0(%arg0: i32) -> (i32, i32, i32) {
    %c0_i32 = arith.constant 0 : i32
    %c0_i32_0 = arith.constant 0 : i32
    %c0_i32_1 = arith.constant 0 : i32
    return %arg0, %c0_i32, %c0_i32_0 : i32, i32, i32
  }
  func.func @transform_1(%arg0: i32) -> (i32, i32) {
    %c0_i32 = arith.constant 0 : i32
    %c0_i32_0 = arith.constant 0 : i32
    %c0_i32_1 = arith.constant 0 : i32
    return %c0_i32, %c0_i32_0 : i32, i32
  }
  func.func @transform_2(%arg0: i32) -> (i32, i32) {
    %c0_i32 = arith.constant 0 : i32
    %c0_i32_0 = arith.constant 0 : i32
    return %arg0, %c0_i32 : i32, i32
  }
}

</mosaic_0001>

<bundles_post_ra>
// kernel: tpu_custom_call.1
= control target key start
LH: loop header
LB: loop body
LE: loop exit
PB: predicated region body
PF: predicated region fallthrough
CT: control target
= control target key end

     0   :  { %7 = vsyncpa [#allocation3], 0  ;;  %s1168_s0 = inlined_call_operand.hbm [shape: s32[2,1,8], index: 0, kind: input, shape index: {}]   ;;  %s1169_s1 = inlined_call_operand.hbm [shape: f32[128,384], index: 1, kind: input, shape index: {}]   ;;  %s1170_s2 = inlined_call_operand.hbm [shape: f32[16,384], index: 2, kind: output, shape index: {}]  }
   0x1   :  { %9 = vsyncpa [#allocation3 + $0x1], 0 }
   0x2   :  { %10 = vsyncpa [#allocation6], 0 }
   0x3   :  { %11 = vsyncpa [#allocation4], 0 }
   0x4   :  { %13 = vsyncpa [#allocation4 + $0x1], 0  ;;  %s909_s9 = smov 0   ;;  %s911_s10 = smov 0  }
   0x5   :  { %s913_s11 = smov 0   ;;  %s915_s12 = smov 0  }
   0x6 LB: > { %s930_s13 = sadd.s32 4294967295, %s884_s12   ;;  %s557_s14 = sadd.s32 4294967294, %s884_s12   ;;  %s884_s12 = sphi %s915_s12, %s1190_s12   ;;  %s880_s11 = sphi %s913_s11, %s1189_s11   ;;  %s876_s10 = sphi %s911_s10, %s1188_s10   ;;  %s872_s9 = sphi %s909_s9, %s1187_s9  }
   0x7   : > { %p39_p0 = scmp.ne.s32.totalorder %s876_s10, %s872_s9  ;;  %p1171_p1 = scmp.eq.s32.totalorder %s930_s13, 0 }
   0x8   : > { %p90_p3 = scmp.eq.s32.totalorder %s557_s14, 1  ;;  %p558_p5 = scmp.ge.s32.totalorder %s884_s12, 1 }
   0x9   : > { %p939_p4 = por %p1171_p1, %p39_p0  ;;  %p97_p7 = scmp.lt.s32.totalorder %s884_s12, 3 }
   0xa   : > { %p944_p6 = por %p90_p3, %p39_p0  ;;  %s886_s18 = smov [#allocation5]  }
   0xb   : > { %s1174_s15 = scalar_select %p939_p4, 1, 0 }
   0xc   : > { %s1175_s16 = scalar_select %p944_p6, 1, 0 }
   0xd   : > { %p949_p8 = pnand %p558_p5, %p97_p7  ;;  %s109_s19 = sshll.u32 %s886_s18, 4  ;;  %s953_s19 = int_to_ptr.vmem [resolvable:$true] %s109_s19 }
   0xe   : > { %s965_s21 = sadd.s32 1, %s884_s12   ;;  %s26_s22 = sadd.s32 1, %s880_s11 }
   0xf   : > { %s1176_s17 = scalar_select %p949_p8, 1, 0 }
  0x10   : > { %p702_p9 = pneg %p949_p8  ;;  %s23_s23 = ssub.s32 %s884_s12, %s965_s21 }
  0x11   : > { %s756_s26 = scalar_lea.hbm %s1169_s1, 6144 }
  0x12   : > { %p960_p11 = pnand %p702_p9, %p1171_p1  ;;  %p757_p12 = scmp.ne.s32.totalorder %s1169_s1, %s756_s26 }
  0x13   : > { %p763_p5 = scmp.lt.u32.totalorder %s756_s26, %s1169_s1 }
  0x14   : > { %p758_p13 = pneg %p960_p11 }
  0x16   : > { %p759_p0 = pnand %p758_p13, %p757_p12 }
  0x18   : > { %p760_p3 = pneg %p759_p0 }
  0x1a   : > { %p765_p7 = pnand %p763_p5, %p760_p3 }
  0x1c   : > { %768 = shalt.err (!%p765_p7)
}
  0x1d   : > { %s769_s3 = scalar_lea.vmem %s953_s19, 6144  ;;  %p777_p2 = scmp.lt.s32.totalorder %s953_s19, %s953_s19 }
  0x1e   : > { %p770_p9 = scmp.ne.s32.totalorder %s953_s19, %s769_s3  ;;  %p778_p6 = scmp.lt.s32.totalorder %s769_s3, %s769_s3 }
  0x20   : > { %p772_p10 = pnand %p770_p9, %p758_p13  ;;  %p779_p4 = por %p778_p6, %p777_p2 }
  0x22   : > { %p773_p1 = pneg %p772_p10 }
  0x24   : > { %p780_p8 = pnand %p779_p4, %p773_p1 }
  0x26   : > { %783 = shalt.err (!%p780_p8)
}
  0x27   : > { %s887_s4 = smov 384   ;;  %s888_s5 = smov 24  }
  0x28   : > { %705 = dma.hbm_to_vmem [thread:$0]  (!%p960_p11), %s1169_s1, 6144, %s953_s19, [#allocation6], %s887_s4, %s887_s4, %s888_s5  }
  0x29   : > { %p24_p2 = scmp.eq.s32.totalorder %s23_s23, 0  ;;  %p33_p1 = scmp.ne.s32.totalorder %s880_s11, %s876_s10 }
  0x2a   : > { %p34_p4 = scmp.eq.s32.totalorder %s884_s12, 0  ;;  %p715_p6 = scmp.lt.s32.totalorder %s884_s12, 2 }
  0x2b   : > { %s996_s8 = scalar_select %p24_p2, %s880_s11, %s26_s22  }
  0x2c   : > { %p35_p8 = por %p34_p4, %p33_p1  ;;  %p1178_p10 = scmp.eq.s32.totalorder %s930_s13, 1 }
  0x2d   : > { %s123_s18 = sand.u32 1, %s880_s11   ;;  %s561_s24 = sshll.u32 %s884_s12, 4 }
  0x2e   : > { %p1000_p12 = por %p1178_p10, %p33_p1  ;;  %s1009_s26 = scalar_lea.hbm %s1168_s0, %s561_s24 }
  0x2f   : > { %s126_s19 = scalar_lea.vmem [#allocation2], %s123_s18  ;;  %p1013_p11 = pnand %p715_p6, %p35_p8 }
  0x30   : > { %s133_s22 = sshll.u32 %s126_s19, 4  ;;  %s124_s27 = scalar_lea.sflag [#allocation3], %s123_s18  ;;  %s1011_s22 = int_to_ptr.vmem [resolvable:$true] %s133_s22 }
  0x31   : > { %s784_s28 = scalar_lea.hbm %s1009_s26, 16  ;;  %p786_p0 = pneg %p1013_p11 }
  0x32   : > { %p785_p13 = scmp.ne.s32.totalorder %s1009_s26, %s784_s28  ;;  %s789_s3 = scalar_lea.hbm %s1168_s0, 32 }
  0x33   : > { %p790_p7 = scmp.lt.u32.totalorder %s1009_s26, %s1168_s0  ;;  %p791_p9 = scmp.lt.u32.totalorder %s789_s3, %s784_s28 }
  0x34   : > { %p787_p3 = pnand %p786_p0, %p785_p13  ;;  %p793_p1 = scmp.lt.u32.totalorder %s784_s28, %s1009_s26 }
  0x35   : > { %p792_p2 = por %p791_p9, %p790_p7 }
  0x36   : > { %p788_p5 = pneg %p787_p3 }
  0x37   : > { %p794_p4 = por %p793_p1, %p792_p2 }
  0x39   : > { %p795_p6 = pnand %p794_p4, %p788_p5 }
  0x3b   : > { %798 = shalt.err (!%p795_p6)
}
  0x3c   : > { %s799_s6 = scalar_lea.vmem %s1011_s22, 16  ;;  %s889_s7 = smov [#allocation2]  }
  0x3d   : > { %p800_p8 = scmp.ne.s32.totalorder %s1011_s22, %s799_s6  ;;  %s804_s18 = sshll.u32 %s889_s7, 4  ;;  %s805_s18 = int_to_ptr.vmem [resolvable:$false] %s804_s18 }
  0x3e   : > { %s806_s24 = scalar_lea.vmem %s805_s18, 32  ;;  %p807_p3 = scmp.lt.s32.totalorder %s1011_s22, %s805_s18 }
  0x3f   : > { %p802_p10 = pnand %p800_p8, %p786_p0  ;;  %p808_p7 = scmp.lt.s32.totalorder %s806_s24, %s799_s6 }
  0x41   : > { %p803_p13 = pneg %p802_p10  ;;  %p809_p9 = por %p808_p7, %p807_p3 }
  0x43   : > { %p810_p2 = pnand %p809_p9, %p803_p13 }
  0x45   : > { %813 = shalt.err (!%p810_p2)
}
  0x46   : > { %709 = dma.hbm_to_vmem [thread:$0]  (!%p1013_p11), %s1009_s26, 16, %s1011_s22, %s124_s27  }
  0x47   : > { %p1181_p5 = scmp.ne.s32.totalorder %s1176_s17, 0 }
  0x48   : > { %s1045_s25 = sand.u32 (!%p1181_p5), 1, %s876_s10   ;;  %p1182_p0 = scmp.ne.s32.totalorder (!%p1181_p5), %s1174_s15, 0 }
  0x49   : > { %142 = sbr.rel (%p1181_p5) target bundleno = 446 (0x1be), region = 28  ;;  %s145_s20 = scalar_lea.sflag (!%p1181_p5), [#allocation3], %s1045_s25 }
  0x4a   : > { %s147_s19 = scalar_lea.vmem (!%p1181_p5), [#allocation2], %s1045_s25 }
  0x50   : > { %859 = dma.done.wait (%p1182_p0), %s145_s20, 16  }
  0x51   : > { %861 = vsyncadd (%p1182_p0), %s145_s20, 4294967280  ;;  %p1183_p1 = scmp.eq.s32.totalorder %s930_s13, 0 }
  0x53   : > { %863 = dma.done.wait (%p1183_p1), [#allocation6], 6144   ;;  %p1184_p11 = pmov %p1183_p1 }
  0x54   : > { %v172_v0 = vlaneseq  ;;  %v890_v1 = vmov 0.0|0.0   ;;  %v891_v2 = vmov 0.0   ;;  %v1062_v5 = vld [vmem:[%s147_s19] ss:$0 sm:$0xff]  ;;  %v242_v10 = vld [vmem:[#allocation5 + $0x8] sm:$0xff]  ;;  %v245_v11 = vld [vmem:[#allocation5 + $0x20] sm:$0xff] }
  0x55   : > { %865 = vsyncadd (%p1184_p11), [#allocation6], 4294961152  ;;  %668 = vmatprep.subr.bf16.mxu1 %v890_v1  ;;  %385 = vmatprep.mubr.f32.mxu0 %v891_v2  ;;  %v241_v12 = vld [vmem:[#allocation5] sm:$0xff]  ;;  %v244_v13 = vld [vmem:[#allocation5 + $0x18] sm:$0xff]  ;;  %v636_v21 = vpack.c.bf16 %v245_v11, %v242_v10  ;;  %vm892_vm5 = vmmov 0   ;;  %s692_s15 = smul.u32 24, %s1045_s25 }
  0x56   : > { %v1059_v3 = vshrl.u32 %v172_v0, 7  ;;  %v243_v14 = vld [vmem:[#allocation5 + $0x10] sm:$0xff]  ;;  %v246_v15 = vld [vmem:[#allocation5 + $0x28] sm:$0xff]  ;;  %v248_v16 = vld [vmem:[#allocation5 + $0x38] sm:$0xff]  ;;  %v638_v22 = vpack.c.bf16 %v244_v13, %v241_v12  ;;  %633 = vmatprep.mubr.msk.f32.mxu1 %vm892_vm5, %v891_v2  ;;  %s693_s22 = smul.u32 384, %s930_s13  ;;  %s466_s29 = scalar_lea.sflag [#allocation4], %s1045_s25 }
  0x57   : > { %v251_v17 = vld [vmem:[#allocation5 + $0x50] sm:$0xff]  ;;  %v669_v23 = vpack.c.bf16 %v246_v15, %v243_v14  ;;  %v250_v25 = vld [vmem:[#allocation5 + $0x48] sm:$0xff]  ;;  %v249_v26 = vld [vmem:[#allocation5 + $0x40] sm:$0xff]  ;;  %637 = vmatprep.subr.bf16.mxu0 %v636_v21  ;;  %s170_s17 = scalar_lea.vmem [#allocation7], %s692_s15  ;;  %s893_s13 = smov [#allocation7]  }
  0x58   : > { %v174_v4 = vadd.s32 8, %v1059_v3  ;;  %vm193_vm0 = vcmp.eq.s32.totalorder %v1062_v5, %v1059_v3  ;;  %v175_v6 = vadd.s32 16, %v1059_v3  ;;  %v176_v9 = vadd.s32 24, %v1059_v3  ;;  %v247_v20 = vld [vmem:[#allocation5 + $0x30] sm:$0xff]  ;;  %v252_v27 = vld [vmem:[#allocation5 + $0x58] sm:$0xff]  ;;  %v254_v28 = vld [vmem:[#allocation5 + $0x68] sm:$0xff]  ;;  %639 = vmatpush1.bf16.msra.mxu0 %v638_v22  ;;  %s1126_s28 = scalar_lea.hbm %s1170_s2, %s693_s22 }
  0x59   : > { %v565_v7 = vsel %vm193_vm0, 1.0, %v891_v2  ;;  %v177_v19 = vadd.s32 32, %v1059_v3  ;;  %v640_v24 = vpack.c.bf16 %v251_v17, %v248_v16  ;;  %v257_v29 = vld [vmem:[#allocation5 + $0x80] sm:$0xff]  ;;  %670 = vmatpush3.bf16.msra.mxu1 %v669_v23  ;;  %v642_v31 = vpack.c.bf16 %v250_v25, %v247_v20  ;;  %v256_v36 = vld [vmem:[#allocation5 + $0x78] sm:$0xff]  ;;  %v255_v37 = vld [vmem:[#allocation5 + $0x70] sm:$0xff]  ;;  %s480_s26 = sshll.u32 %s170_s17, 4  ;;  %s1121_s26 = int_to_ptr.vmem [resolvable:$true] %s480_s26 }
  0x5a   : > { %vm194_vm1 = vcmp.eq.s32.totalorder %v1062_v5, %v174_v4  ;;  %289 = vxpose.xlu0.b32.start [1/16] (narrow) %v565_v7, 8  ;;  %vm195_vm2 = vcmp.eq.s32.totalorder %v1062_v5, %v175_v6  ;;  %vm196_vm3 = vcmp.eq.s32.totalorder %v1062_v5, %v176_v9  ;;  %v672_v32 = vpack.c.bf16 %v252_v27, %v249_v26  ;;  %v253_v33 = vld [vmem:[#allocation5 + $0x60] sm:$0xff]  ;;  %v258_v38 = vld [vmem:[#allocation5 + $0x88] sm:$0xff]  ;;  %v260_v39 = vld [vmem:[#allocation5 + $0x98] sm:$0xff]  ;;  %s814_s30 = scalar_lea.vmem %s1121_s26, 384  ;;  %s818_s3 = sshll.u32 %s893_s13, 4  ;;  %s819_s3 = int_to_ptr.vmem [resolvable:$false] %s818_s3 }
  0x5b   : > { %v566_v8 = vsel %vm194_vm1, 1.0, %v891_v2  ;;  %v567_v18 = vsel %vm195_vm2, 1.0, %v891_v2  ;;  %v568_v30 = vsel %vm196_vm3, 1.0, %v891_v2  ;;  %vm197_vm4 = vcmp.eq.s32.totalorder %v1062_v5, %v177_v19  ;;  %641 = vmatprep.subr.bf16.mxu0 %v640_v24  ;;  %671 = vmatprep.subr.bf16.mxu1 %v890_v1  ;;  %v263_v40 = vld [vmem:[#allocation5 + $0xb0] sm:$0xff]  ;;  %v262_v47 = vld [vmem:[#allocation5 + $0xa8] sm:$0xff]  ;;  %v261_v48 = vld [vmem:[#allocation5 + $0xa0] sm:$0xff]  ;;  %p815_p4 = scmp.ne.s32.totalorder %s1121_s26, %s814_s30  ;;  %p821_p10 = scmp.lt.s32.totalorder %s1121_s26, %s819_s3 }
  0x5c   : > { %v178_v34 = vadd.s32 40, %v1059_v3  ;;  %v644_v35 = vpack.c.bf16 %v257_v29, %v254_v28  ;;  %v569_v41 = vsel %vm197_vm4, 1.0, %v891_v2  ;;  %643 = vmatpush1.bf16.msra.mxu0 %v642_v31  ;;  %v646_v42 = vpack.c.bf16 %v256_v36, %v253_v33  ;;  %v259_v44 = vld [vmem:[#allocation5 + $0x90] sm:$0xff]  ;;  %v264_v49 = vld [vmem:[#allocation5 + $0xb8] sm:$0xff]  ;;  %v266_v50 = vld [vmem:[#allocation5 + $0xc8] sm:$0xff]  ;;  %s820_s4 = scalar_lea.vmem %s819_s3, 768 }
  0x5d   : > { %673 = vmatpush3.bf16.msra.mxu1 %v672_v32  ;;  %v675_v43 = vpack.c.bf16 %v258_v38, %v255_v37  ;;  %v179_v45 = vadd.s32 48, %v1059_v3  ;;  %v648_v46 = vpack.c.bf16 %v263_v40, %v260_v39  ;;  %v269_v51 = vld [vmem:[#allocation5 + $0xe0] sm:$0xff]  ;;  %v650_v53 = vpack.c.bf16 %v262_v47, %v259_v44  ;;  %v268_v58 = vld [vmem:[#allocation5 + $0xd8] sm:$0xff]  ;;  %v267_v59 = vld [vmem:[#allocation5 + $0xd0] sm:$0xff]  ;;  %p816_p6 = pnand %p815_p4, %p1000_p12  ;;  %p822_p13 = scmp.lt.s32.totalorder %s820_s4, %s814_s30 }
  0x5e   : > { %290 = vxpose.xlu0.b32.cont [2/16] (narrow) %v566_v8, 8  ;;  %vm198_vm6 = vcmp.eq.s32.totalorder %v1062_v5, %v178_v34  ;;  %645 = vmatprep.subr.bf16.mxu0 %v644_v35  ;;  %v678_v54 = vpack.c.bf16 %v264_v49, %v261_v48  ;;  %v265_v55 = vld [vmem:[#allocation5 + $0xc0] sm:$0xff]  ;;  %v180_v56 = vadd.s32 56, %v1059_v3  ;;  %v652_v57 = vpack.c.bf16 %v269_v51, %v266_v50  ;;  %v270_v60 = vld [vmem:[#allocation5 + $0xe8] sm:$0xff]  ;;  %v272_v61 = vld [vmem:[#allocation5 + $0xf8] sm:$0xff] }
  0x5f   : > { %674 = vmatprep.subr.bf16.mxu1 %v890_v1  ;;  %v570_v52 = vsel %vm198_vm6, 1.0, %v891_v2  ;;  %vm199_vm7 = vcmp.eq.s32.totalorder %v1062_v5, %v179_v45  ;;  %v275_v62 = vld [vmem:[#allocation5 + $0x110] sm:$0xff]  ;;  %v654_v0 = vpack.c.bf16 %v268_v58, %v265_v55  ;;  %v681_v4 = vpack.c.bf16 %v270_v60, %v267_v59  ;;  %v274_v9 = vld [vmem:[#allocation5 + $0x108] sm:$0xff]  ;;  %v273_v10 = vld [vmem:[#allocation5 + $0x100] sm:$0xff]  ;;  %p817_p8 = pneg %p816_p6  ;;  %p823_p3 = por %p822_p13, %p821_p10 }
  0x60   : > { %647 = vmatpush1.bf16.msra.mxu0 %v646_v42  ;;  %v571_v63 = vsel %vm199_vm7, 1.0, %v891_v2  ;;  %v271_v6 = vld [vmem:[#allocation5 + $0xf0] sm:$0xff]  ;;  %vm200_vm8 = vcmp.eq.s32.totalorder %v1062_v5, %v180_v56  ;;  %v181_v7 = vadd.s32 64, %v1059_v3  ;;  %v656_v8 = vpack.c.bf16 %v275_v62, %v272_v61  ;;  %v276_v11 = vld [vmem:[#allocation5 + $0x118] sm:$0xff]  ;;  %v278_v12 = vld [vmem:[#allocation5 + $0x128] sm:$0xff] }
  0x61   : > { %676 = vmatpush3.bf16.msra.mxu1 %v675_v43  ;;  %649 = vmatprep.subr.bf16.mxu0 %v648_v46  ;;  %v281_v13 = vld [vmem:[#allocation5 + $0x140] sm:$0xff]  ;;  %v572_v14 = vsel %vm200_vm8, 1.0, %v891_v2  ;;  %v658_v15 = vpack.c.bf16 %v274_v9, %v271_v6  ;;  %v684_v16 = vpack.c.bf16 %v276_v11, %v273_v10  ;;  %v280_v20 = vld [vmem:[#allocation5 + $0x138] sm:$0xff]  ;;  %v279_v21 = vld [vmem:[#allocation5 + $0x130] sm:$0xff]  ;;  %v183_v29 = vadd.s32 80, %v1059_v3  ;;  %p824_p7 = pnand %p823_p3, %p817_p8 }
  0x62   : > { %291 = vxpose.xlu0.b32.cont [3/16] (narrow) %v567_v18, 8  ;;  %677 = vmatprep.subr.bf16.mxu1 %v890_v1  ;;  %v277_v17 = vld [vmem:[#allocation5 + $0x120] sm:$0xff]  ;;  %vm201_vm9 = vcmp.eq.s32.totalorder %v1062_v5, %v181_v7  ;;  %v182_v18 = vadd.s32 72, %v1059_v3  ;;  %v660_v19 = vpack.c.bf16 %v281_v13, %v278_v12  ;;  %v282_v22 = vld [vmem:[#allocation5 + $0x148] sm:$0xff]  ;;  %v284_v23 = vld [vmem:[#allocation5 + $0x158] sm:$0xff]  ;;  %v184_v37 = vadd.s32 88, %v1059_v3 }
  0x63   : > { %v287_v24 = vld [vmem:[#allocation5 + $0x170] sm:$0xff]  ;;  %v573_v25 = vsel %vm201_vm9, 1.0, %v891_v2  ;;  %v662_v26 = vpack.c.bf16 %v280_v20, %v277_v17  ;;  %v687_v27 = vpack.c.bf16 %v282_v22, %v279_v21  ;;  %v286_v31 = vld [vmem:[#allocation5 + $0x168] sm:$0xff]  ;;  %v285_v32 = vld [vmem:[#allocation5 + $0x160] sm:$0xff]  ;;  %vm203_vm11 = vcmp.eq.s32.totalorder %v1062_v5, %v183_v29 }
  0x64   : > { %651 = vmatpush1.bf16.msra.mxu0 %v650_v53  ;;  %v283_v28 = vld [vmem:[#allocation5 + $0x150] sm:$0xff]  ;;  %vm202_vm10 = vcmp.eq.s32.totalorder %v1062_v5, %v182_v18  ;;  %v288_v33 = vld [vmem:[#allocation5 + $0x178] sm:$0xff]  ;;  %v575_v38 = vsel %vm203_vm11, 1.0, %v891_v2  ;;  %vm204_vm12 = vcmp.eq.s32.totalorder %v1062_v5, %v184_v37  ;;  %v185_v39 = vadd.s32 96, %v1059_v3 }
  0x65   : > { %679 = vmatpush3.bf16.msra.mxu1 %v678_v54  ;;  %653 = vmatprep.subr.bf16.mxu0 %v652_v57  ;;  %v574_v34 = vsel %vm202_vm10, 1.0, %v891_v2  ;;  %v666_v35 = vpack.c.bf16 %v286_v31, %v283_v28  ;;  %v690_v36 = vpack.c.bf16 %v288_v33, %v285_v32  ;;  %v576_v40 = vsel %vm204_vm12, 1.0, %v891_v2 }
  0x66   : > { %292 = vxpose.xlu0.b32.cont [4/16] (narrow) %v568_v30, 8  ;;  %680 = vmatprep.subr.bf16.mxu1 %v890_v1  ;;  %v664_v30 = vpack.c.bf16 %v287_v24, %v284_v23  ;;  %vm205_vm13 = vcmp.eq.s32.totalorder %v1062_v5, %v185_v39  ;;  %v188_v44 = vadd.s32 120, %v1059_v3 }
  0x67   : > { %v577_v42 = vsel %vm205_vm13, 1.0, %v891_v2 }
  0x68   : > { %655 = vmatpush1.bf16.msra.mxu0 %v654_v0  ;;  %vm208_vm0 = vcmp.eq.s32.totalorder %v1062_v5, %v188_v44 }
  0x69   : > { %682 = vmatpush3.bf16.msra.mxu1 %v681_v4  ;;  %657 = vmatprep.subr.bf16.mxu0 %v656_v8  ;;  %v580_v46 = vsel %vm208_vm0, 1.0, %v891_v2 }
  0x6a   : > { %293 = vxpose.xlu0.b32.cont [5/16] (narrow) %v569_v41, 8  ;;  %683 = vmatprep.subr.bf16.mxu1 %v890_v1  ;;  %v186_v41 = vadd.s32 104, %v1059_v3 }
  0x6c   : > { %659 = vmatpush1.bf16.msra.mxu0 %v658_v15  ;;  %vm206_vm14 = vcmp.eq.s32.totalorder %v1062_v5, %v186_v41 }
  0x6d   : > { %685 = vmatpush3.bf16.msra.mxu1 %v684_v16  ;;  %661 = vmatprep.subr.bf16.mxu0 %v660_v19  ;;  %v578_v43 = vsel %vm206_vm14, 1.0, %v891_v2 }
  0x6e   : > { %294 = vxpose.xlu0.b32.cont [6/16] (narrow) %v570_v52, 8  ;;  %686 = vmatprep.subr.bf16.mxu1 %v890_v1 }
  0x70   : > { %663 = vmatpush1.bf16.msra.mxu0 %v662_v26 }
  0x71   : > { %688 = vmatpush3.bf16.msra.mxu1 %v687_v27  ;;  %665 = vmatprep.subr.bf16.mxu0 %v664_v30 }
  0x72   : > { %295 = vxpose.xlu0.b32.cont [7/16] (narrow) %v571_v63, 8  ;;  %689 = vmatprep.subr.bf16.mxu1 %v890_v1  ;;  %v187_v1 = vadd.s32 112, %v1059_v3 }
  0x74   : > { %667 = vmatpush1.bf16.msra.mxu0 %v666_v35  ;;  %vm207_vm15 = vcmp.eq.s32.totalorder %v1062_v5, %v187_v1 }
  0x75   : > { %691 = vmatpush3.bf16.msra.mxu1 %v690_v36  ;;  %v579_v45 = vsel %vm207_vm15, 1.0, %v891_v2 }
  0x76   : > { %296 = vxpose.xlu0.b32.cont [8/16] (narrow) %v572_v14, 8 }
  0x7a   : > { %297 = vxpose.xlu0.b32.cont [9/16] (narrow) %v573_v25, 8 }
  0x7e   : > { %298 = vxpose.xlu0.b32.cont [10/16] (narrow) %v574_v34, 8 }
  0x82   : > { %299 = vxpose.xlu0.b32.cont [11/16] (narrow) %v575_v38, 8 }
  0x86   : > { %300 = vxpose.xlu0.b32.cont [12/16] (narrow) %v576_v40, 8 }
  0x8a   : > { %301 = vxpose.xlu0.b32.cont [13/16] (narrow) %v577_v42, 8 }
  0x8e   : > { %302 = vxpose.xlu0.b32.cont [14/16] (narrow) %v578_v43, 8 }
  0x92   : > { %303 = vxpose.xlu0.b32.cont [15/16] (narrow) %v579_v45, 8 }
  0x96   : > { %304 = vxpose.xlu0.b32.end [16/16] (narrow) %v580_v46, 8 }
  0xda   : > { %v305_v47 = vpop.trf.xlu0 }
  0xdb   : > { %386 = vmatmul.mubr.f32.vlgmr.msra.gmra.mrb[0].mxu0 %v305_v47  ;;  %634 = vmatmul.mubr.f32.vlgmr.msra.gmra.mrb[0].mxu1 %v305_v47 }
 0x1ae   : > { %v387_v3 = vpop.f32.mrb[0].mxu0  ;;  %v458_v48 = vpop.f32.mrb[0].mxu1 }
 0x1af   : > { %462 = vst [vmem:[%s170_s17] sm:$0xff] %v387_v3  ;;  %464 = vst [vmem:[%s170_s17 + $0x10] sm:$0xff] %v458_v48  ;;  %v389_v2 = vpop.f32.mrb[1].mxu0  ;;  %v635_v5 = vpop.f32.mrb[1].mxu1 }
 0x1b0   : > { %463 = vst [vmem:[%s170_s17 + $0x8] sm:$0xff] %v389_v2 }
 0x1b1   : > { %827 = shalt.err (!%p824_p7)
}
 0x1b2   : > { %s828_s5 = scalar_lea.hbm %s1126_s28, 384  ;;  %s832_s18 = scalar_lea.hbm %s1170_s2, 768 }
 0x1b3   : > { %p829_p9 = scmp.ne.s32.totalorder %s1126_s28, %s828_s5  ;;  %p833_p0 = scmp.lt.u32.totalorder %s1126_s28, %s1170_s2 }
 0x1b4   : > { %p834_p1 = scmp.lt.u32.totalorder %s832_s18, %s828_s5  ;;  %p836_p4 = scmp.lt.u32.totalorder %s828_s5, %s1126_s28 }
 0x1b5   : > { %p830_p2 = pnand %p829_p9, %p1000_p12 }
 0x1b6   : > { %p835_p11 = por %p834_p1, %p833_p0 }
 0x1b7   : > { %p831_p5 = pneg %p830_p2 }
 0x1b8   : > { %p837_p6 = por %p836_p4, %p835_p11 }
 0x1ba   : > { %p838_p8 = pnand %p837_p6, %p831_p5 }
 0x1bc   : > { %841 = shalt.err (!%p838_p8)
}
 0x1bd   : > { %700 = dma.vmem_to_hbm [thread:$0]  (%p1000_p12), %s1121_s26, 384, %s1126_s28, %s466_s29  }
 0x1be PF: > { %s492_s20 = sand.u32 1, %s872_s9   ;;  %p1185_p10 = scmp.ne.s32.totalorder %s1175_s16, 0 }
 0x1bf   : > { %p1186_p13 = scmp.ge.s32.totalorder %s884_s12, 2  ;;  %s493_s19 = scalar_lea.sflag [#allocation4], %s492_s20 }
 0x1c1   : > { %p711_p3 = pnand %p1186_p13, %p1185_p10 }
 0x1c3   : > { %867 = dma.done.wait (!%p711_p3), %s493_s19, 384  }
 0x1c4   : > { %869 = vsyncadd (!%p711_p3), %s493_s19, 4294966912  ;;  %p16_p7 = scmp.ge.s32.totalorder %s965_s21, 4   ;;  %s1187_s9 = smov %s876_s10 }
 0x1c5   : > { %s1188_s10 = smov %s880_s11  ;;  %s1189_s11 = smov %s996_s8 }
 0x1c6   : > { %s1190_s12 = smov %s965_s21  ;;  %18 = sbr.rel (!%p16_p7) target bundleno = 6 (0x6), region = 77 }
 0x1cd   :  { %498 = vsyncpa [#allocation3], 1 }
 0x1ce   :  { %500 = vsyncpa [#allocation3 + $0x1], 1 }
 0x1cf   :  { %501 = vsyncpa [#allocation6], 1 }
 0x1d0   :  { %502 = vsyncpa [#allocation4], 1 }
 0x1d1   :  { %504 = vsyncpa [#allocation4 + $0x1], 1 }

</bundles_post_ra>
